<compile_context>
chip_gen: v5e
topology: v5e:2x2
jax: 0.10.0
libtpu: 0.0.40
codegen_flags: <defaults>
</compile_context>

<pallas_src>
import jax
import jax.numpy as jnp
from jax.experimental import pallas as pl
from jax.experimental.pallas import tpu as pltpu


def _linear_tanh_kernel(x_ref, w_ref, b_ref, o_ref):
    """y = tanh(x @ w + b), with the tiny contraction done as VPU FMAs."""
    x = x_ref[...]                      # [TB, D_in]  (one f32 vreg at these sizes)
    w = w_ref[...]                      # [D_in, D_out]
    y = b_ref[...]                      # [1, D_out] -> broadcasts over batch rows
    d_in = x_ref.shape[1]               # static (3) -> loop fully unrolls at trace time
    for k in range(d_in):
        # [TB,1] * [1,D_out] broadcast FMA on the VALU; no MXU push/pop latency.
        y = y + x[:, k:k + 1] * w[k:k + 1, :]
    o_ref[...] = jnp.tanh(y).astype(o_ref.dtype)   # tanh goes to the EUP


def pendulum_env_model_forward(obs, w_t, b, *, batch_tile=512):
    """Pallas implementation of PendulumEnvModel.forward.

    obs : [B, D_in] float32
    w_t : [D_in, D_out] float32  (PyTorch weight [D_out, D_in], transposed)
    b   : [1, D_out] float32
    returns [B, D_out] float32
    """
    B, D_in = obs.shape
    D_out = w_t.shape[1]
    out_shape = jax.ShapeDtypeStruct((B, D_out), jnp.float32)

    if B <= batch_tile:
        # Single tiny block: no grid, no double-buffered DMA pipeline — all
        # operands live whole in VMEM and the body executes exactly once.
        return pl.pallas_call(
            _linear_tanh_kernel,
            out_shape=out_shape,
            in_specs=[
                pl.BlockSpec(memory_space=pltpu.MemorySpace.VMEM),
                pl.BlockSpec(memory_space=pltpu.MemorySpace.VMEM),
                pl.BlockSpec(memory_space=pltpu.MemorySpace.VMEM),
            ],
            out_specs=pl.BlockSpec(memory_space=pltpu.MemorySpace.VMEM),
        )(obs, w_t, b)

    # Large-batch path (many vectorized env instances): tile the batch on a
    # "parallel" grid axis so v7x's 2 TensorCores split the work. D_in/D_out
    # blocks equal the full array dims and batch_tile is a multiple of 8, so
    # the (8,128) rule is satisfied. Weights/bias (<100 B) are re-fetched per
    # tile, which costs nothing next to the obs stream (the op is HBM-bound).
    assert B % batch_tile == 0, "pad batch to a multiple of batch_tile"
    return pl.pallas_call(
        _linear_tanh_kernel,
        out_shape=out_shape,
        grid=(B // batch_tile,),
        in_specs=[
            pl.BlockSpec((batch_tile, D_in), lambda i: (i, 0)),
            pl.BlockSpec((D_in, D_out), lambda i: (0, 0)),
            pl.BlockSpec((1, D_out), lambda i: (0, 0)),
        ],
        out_specs=pl.BlockSpec((batch_tile, D_out), lambda i: (i, 0)),
        compiler_params=pltpu.CompilerParams(
            dimension_semantics=("parallel",)),
    )(obs, w_t, b)


def init_params(key, obs_dim, out_dim=3):
    """Deterministic init matching nn.Linear's default U(-1/sqrt(in), 1/sqrt(in))."""
    k_w, k_b = jax.random.split(key)
    bound = 1.0 / jnp.sqrt(jnp.float32(obs_dim))
    # PyTorch weight is [out_dim, obs_dim]; store transposed for the kernel.
    w = jax.random.uniform(k_w, (out_dim, obs_dim), jnp.float32, -bound, bound)
    b = jax.random.uniform(k_b, (out_dim,), jnp.float32, -bound, bound)
    return w.T, b.reshape(1, out_dim)


if __name__ == "__main__":
    # Pendulum observation space: (cos theta, sin theta, theta_dot) -> obs_dim = 3
    obs_dim = 3
    batch = 8
    key = jax.random.PRNGKey(0)
    k_obs, k_params = jax.random.split(key)

    obs = jax.random.normal(k_obs, (batch, obs_dim), jnp.float32)
    w_t, b = init_params(k_params, obs_dim, out_dim=3)

    # TODO(synk): the original PyTorch forward has `return x` with undefined `x`
    # (a bug); we return the Linear+Tanh embedding, which is clearly the intent.
    out = jax.block_until_ready(pendulum_env_model_forward(obs, w_t, b))

    # Sanity check against pure-JAX reference.
    ref = jnp.tanh(obs @ w_t + b)
    assert out.shape == (batch, 3)
    assert jnp.allclose(out, ref, atol=1e-5, rtol=1e-5), "mismatch vs reference"

    # Also exercise the tiled large-batch (vectorized-env) path once.
    big = 1024
    obs_big = jax.random.normal(k_obs, (big, obs_dim), jnp.float32)
    out_big = jax.block_until_ready(pendulum_env_model_forward(obs_big, w_t, b))
    ref_big = jnp.tanh(obs_big @ w_t + b)
    assert out_big.shape == (big, 3)
    assert jnp.allclose(out_big, ref_big, atol=1e-5, rtol=1e-5), "mismatch (tiled path)"

    print("KERNEL_OK")
</pallas_src>

<mosaic_0001>
module attributes {stable_mosaic.version = 11 : i64} {
  func.func @_linear_tanh_kernel(%arg0: memref<8x3xf32, #tpu.memory_space<vmem>>, %arg1: memref<3x3xf32, #tpu.memory_space<vmem>>, %arg2: memref<1x3xf32, #tpu.memory_space<vmem>>, %arg3: memref<8x3xf32, #tpu.memory_space<vmem>>) attributes {dimension_semantics = [], scalar_prefetch = 0 : i64, scratch_operands = 0 : i64, tpu.core_type = #tpu.core_type<tc>} {
    %c0 = arith.constant 0 : index
    %c0_0 = arith.constant 0 : index
    %0 = vector.load %arg0[%c0, %c0_0] : memref<8x3xf32, #tpu.memory_space<vmem>>, vector<8x3xf32>
    %c0_1 = arith.constant 0 : index
    %c0_2 = arith.constant 0 : index
    %1 = vector.load %arg1[%c0_1, %c0_2] : memref<3x3xf32, #tpu.memory_space<vmem>>, vector<3x3xf32>
    %c0_3 = arith.constant 0 : index
    %c0_4 = arith.constant 0 : index
    %2 = vector.load %arg2[%c0_3, %c0_4] : memref<1x3xf32, #tpu.memory_space<vmem>>, vector<1x3xf32>
    %3 = vector.extract_strided_slice %0 {offsets = [0, 0], sizes = [8, 1], strides = [1, 1]} : vector<8x3xf32> to vector<8x1xf32>
    %4 = vector.extract_strided_slice %1 {offsets = [0, 0], sizes = [1, 3], strides = [1, 1]} : vector<3x3xf32> to vector<1x3xf32>
    %5 = vector.broadcast %3 : vector<8x1xf32> to vector<8x3xf32>
    %6 = vector.broadcast %4 : vector<1x3xf32> to vector<8x3xf32>
    %7 = arith.mulf %5, %6 : vector<8x3xf32>
    %8 = vector.broadcast %2 : vector<1x3xf32> to vector<8x3xf32>
    %9 = arith.addf %8, %7 : vector<8x3xf32>
    %10 = vector.extract_strided_slice %0 {offsets = [0, 1], sizes = [8, 1], strides = [1, 1]} : vector<8x3xf32> to vector<8x1xf32>
    %11 = vector.extract_strided_slice %1 {offsets = [1, 0], sizes = [1, 3], strides = [1, 1]} : vector<3x3xf32> to vector<1x3xf32>
    %12 = vector.broadcast %10 : vector<8x1xf32> to vector<8x3xf32>
    %13 = vector.broadcast %11 : vector<1x3xf32> to vector<8x3xf32>
    %14 = arith.mulf %12, %13 : vector<8x3xf32>
    %15 = arith.addf %9, %14 : vector<8x3xf32>
    %16 = vector.extract_strided_slice %0 {offsets = [0, 2], sizes = [8, 1], strides = [1, 1]} : vector<8x3xf32> to vector<8x1xf32>
    %17 = vector.extract_strided_slice %1 {offsets = [2, 0], sizes = [1, 3], strides = [1, 1]} : vector<3x3xf32> to vector<1x3xf32>
    %18 = vector.broadcast %16 : vector<8x1xf32> to vector<8x3xf32>
    %19 = vector.broadcast %17 : vector<1x3xf32> to vector<8x3xf32>
    %20 = arith.mulf %18, %19 : vector<8x3xf32>
    %21 = arith.addf %15, %20 : vector<8x3xf32>
    %22 = math.tanh %21 : vector<8x3xf32>
    %c0_5 = arith.constant 0 : index
    %c0_6 = arith.constant 0 : index
    %23 = vector.load %arg3[%c0_5, %c0_6] : memref<8x3xf32, #tpu.memory_space<vmem>>, vector<8x3xf32>
    tpu.vector_store %arg3[%c0_5, %c0_6], %22 {strides = array<i32>} : memref<8x3xf32, #tpu.memory_space<vmem>>, vector<8x3xf32>,
    return
  }
}

</mosaic_0001>

<bundles_post_ra>
// kernel: tpu_custom_call.1
= control target key start
LH: loop header
LB: loop body
LE: loop exit
PB: predicated region body
PF: predicated region fallthrough
CT: control target
= control target key end

     0   :  { %v59_v0 = vmov 0   ;;  %v60_v2 = vmov 2   ;;  %v61_v3 = vmov 1   ;;  %vm43_vm0 = vcmask 23552   ;;  %s94_s0 = inlined_call_operand.vmem [shape: f32[8,3], index: 0, kind: input, shape index: {}]   ;;  %s95_s2 = inlined_call_operand.vmem [shape: f32[1,3], index: 2, kind: input, shape index: {}]   ;;  %s96_s1 = inlined_call_operand.vmem [shape: f32[3,3], index: 1, kind: input, shape index: {}]   ;;  %s97_s3 = inlined_call_operand.vmem [shape: f32[8,3], index: 3, kind: output, shape index: {}]  }
   0x1   :  { %52 = vset.pattern.permute.xlu0 %v59_v0  ;;  %v14_v1 = vld [vmem:[%s94_s0] sm:$0xff]  ;;  %54 = vset.pattern.permute.xlu1 %v60_v2 }
   0x2   :  { %19 = vperm.xlu0 %52, %v14_v1   ;;  %36 = vperm.xlu1 %54, %v14_v1   ;;  %v15_v4 = vld [vmem:[%s96_s1] sm:$0x7] }
   0x3   :  { %v22_v6 = vperm.slane %v15_v4, 0  ;;  %v56_v7 = vld [vmem:[%s95_s2] ss:$0 sm:$0xff]  ;;  %v32_v9 = vperm.slane %v15_v4, 1  ;;  %v39_v10 = vperm.slane %v15_v4, 2 }
   0xa   :  { %53 = vset.pattern.permute.xlu0 %v61_v3 }
   0xb   :  { %29 = vperm.xlu0 %53, %v14_v1  }
  0x13   :  { %55 = vset.pattern.permute.xlu0 %v60_v2 }
  0x74   :  { %v20_v5 = vpop.permute.xlu0 %19  ;;  %v37_v11 = vpop.permute.xlu1 %36 }
  0x75   :  { %v23_v8 = vmul.f32 %v22_v6, %v20_v5  ;;  %v40_v15 = vmul.f32 %v39_v10, %v37_v11 }
  0x77   :  { %v27_v13 = vadd.f32 %v56_v7, %v23_v8 }
  0x7d   :  { %v30_v12 = vpop.permute.xlu0 %29 }
  0x7e   :  { %v33_v14 = vmul.f32 %v32_v9, %v30_v12 }
  0x80   :  { %v34_v16 = vadd.f32 %v33_v14, %v27_v13 }
  0x82   :  { %v41_v17 = vadd.f32 %v40_v15, %v34_v16 }
  0x84   :  { %57 = vtanh.f32 %v41_v17 }
  0x8a   :  { %v58_v18 = vpop.eup %57 }
  0x8b   :  { %44 = vst.msk [vmem:[%s97_s3] sm:$0xff] %vm43_vm0, %v58_v18 }

</bundles_post_ra>
